<compile_context>
chip_gen: v7x
topology: tpu7x:2x2x1
jax: 0.10.0
libtpu: 0.0.40
codegen_flags: <defaults>
</compile_context>

<pallas_src>
import math
from functools import partial

import jax
import jax.numpy as jnp
from jax.experimental import pallas as pl
from jax.experimental.pallas import tpu as pltpu

_INV_SQRT2 = 1.0 / math.sqrt(2.0)

# Flipped to False (and cached) if this JAX build rejects single-buffered
# BlockSpecs (pipeline_mode=pl.Buffered(1)) for the constant-index weights.
_SINGLE_BUFFER_WEIGHTS_OK = True


def _round_up(x, m):
    return ((x + m - 1) // m) * m


def _cdiv(a, b):
    return -(-a // b)


def _vmem_budget_bytes():
    """~3/4 of this chip's physical VMEM (~96 MiB v5e/v6e, ~48 MiB v7x)."""
    try:
        cap = int(pltpu.get_tpu_info().vmem_capacity_bytes)
    except Exception:
        cap = 64 << 20                        # conservative fallback (v7x-sized)
    return (cap * 3) // 4


def _erf(z):
    """erf via Abramowitz & Stegun 7.1.26 (|error| <= 1.5e-7).

    Uses only ops with guaranteed Mosaic lowerings (abs/exp/div/select) so the
    exact-GELU epilogue never depends on a lax.erf lowering rule.
    """
    p = 0.3275911
    a1, a2, a3, a4, a5 = (0.254829592, -0.284496736, 1.421413741,
                          -1.453152027, 1.061405429)
    az = jnp.abs(z)
    t = 1.0 / (1.0 + p * az)
    poly = t * (a1 + t * (a2 + t * (a3 + t * (a4 + t * a5))))
    e = 1.0 - poly * jnp.exp(-az * az)
    return jnp.where(z < 0.0, -e, e)


def _mlp_head_kernel(x_ref, w1_ref, b1_ref, g_ref, beta_ref, w2_ref, b2_ref,
                     out_ref, acc_ref, *, hw, inv_hw, inv_hidden, mask_hw):
    """Grid = (batch tiles, H*W tiles).  acc_ref: (TB, C) f32 pooled-sum scratch."""
    s = pl.program_id(1)

    @pl.when(s == 0)
    def _init():
        acc_ref[...] = jnp.zeros_like(acc_ref)

    # x tile is (TB, C, THW) in its native dtype, streamed once from HBM.
    # Pool = cross-lane (XLU) reduce over the H*W lane axis; result is (TB, C)
    # with C lane-dense, ready for fc1.
    xt = x_ref[...].astype(jnp.float32)
    if mask_hw:                                     # static: H*W tail is ragged
        thw = x_ref.shape[-1]
        lane = jax.lax.broadcasted_iota(jnp.int32, xt.shape, 2) + s * thw
        xt = jnp.where(lane < hw, xt, 0.0)
    acc_ref[...] += jnp.sum(xt, axis=-1)

    @pl.when(s == pl.num_programs(1) - 1)
    def _finalize():
        # Global average pool: divide by the TRUE H*W (masked lanes were zero).
        pooled = acc_ref[...] * inv_hw                               # (TB, C) f32

        # fc1 (MXU, f32 accumulate).
        h = jnp.dot(pooled.astype(w1_ref.dtype), w1_ref[...],
                    preferred_element_type=jnp.float32) + b1_ref[...]

        # GELU (exact / erf form -> nn.GELU default).
        h = 0.5 * h * (1.0 + _erf(h * _INV_SQRT2))

        # LayerNorm(eps=1e-6): two-pass variance (no E[x^2]-E[x]^2 cancellation).
        mu = jnp.sum(h, axis=-1, keepdims=True) * inv_hidden
        d = h - mu
        var = jnp.sum(d * d, axis=-1, keepdims=True) * inv_hidden
        h = d * jax.lax.rsqrt(var + 1e-6)
        h = h * g_ref[...] + beta_ref[...]

        # Dropout(p=0.0) is the identity -> nothing to do.

        # fc2 (MXU, f32 accumulate); output block is lane-dense (padded classes).
        out_ref[...] = (jnp.dot(h.astype(w2_ref.dtype), w2_ref[...],
                                preferred_element_type=jnp.float32) + b2_ref[...])


def mlp_classifier_head(x_nchw, params, *, weight_dtype=jnp.bfloat16,
                        batch_tile=None, x_tile_bytes=8 << 20):
    """x_nchw: (B, C, H, W), any float dtype.  Returns (B, num_classes) float32."""
    global _SINGLE_BUFFER_WEIGHTS_OK

    B, C, H, W = x_nchw.shape
    HW = H * W
    hidden = params["w1"].shape[1]
    num_classes = params["w2"].shape[1]
    NC_pad = _round_up(num_classes, 128)            # lane-dense output stores

    # ---- operand prep: x is a FREE reshape (no transpose / pad / upcast) ----
    x = x_nchw.reshape(B, C, HW)
    w1 = params["w1"].astype(weight_dtype)                          # (C, hidden)
    b1 = params["b1"].astype(jnp.float32)                           # (1, hidden)
    gamma = params["gamma"].astype(jnp.float32)                     # (1, hidden)
    beta = params["beta"].astype(jnp.float32)                       # (1, hidden)
    w2 = jnp.pad(params["w2"],
                 ((0, 0), (0, NC_pad - num_classes))).astype(weight_dtype)
    b2 = jnp.pad(params["b2"],
                 ((0, 0), (0, NC_pad - num_classes))).astype(jnp.float32)

    # ---- tile sizing from the per-generation VMEM budget ----
    if batch_tile is None:
        batch_tile = 256 if B >= 256 else 128       # 256-row M tiles fill v6e/v7x MXU
    TB = min(batch_tile, B)                         # == B, or a multiple of 8

    xsz = x.dtype.itemsize
    wsz = jnp.dtype(weight_dtype).itemsize
    budget = _vmem_budget_bytes()

    def _plan(tb):
        # Conservatively assume default double-buffering for every operand so
        # the estimate stays valid even if Buffered(1) is not honoured.
        fixed = (2 * (C * hidden * wsz + hidden * NC_pad * wsz
                      + (3 * hidden + NC_pad) * 4)
                 + 2 * tb * NC_pad * 4              # output tile
                 + tb * C * 4)                      # pooled-sum accumulator
        per_elem = 2 * tb * C * xsz                 # x bytes per H*W element (2 bufs)
        thw = min(max((budget - fixed) // per_elem, 128),
                  max(x_tile_bytes // (tb * C * xsz), 128))
        if HW <= 128 or thw >= HW:
            thw = HW                                # single full-extent tile
        else:
            thw = (thw // 128) * 128                # lane-aligned; tail masked
        return thw, fixed + 2 * tb * C * thw * xsz

    THW, est = _plan(TB)
    while est > budget and TB > 8:                  # shrink batch tile before
        TB = max(8, TB // 2)                        # over-declaring VMEM
        THW, est = _plan(TB)

    # Never declare less than the estimate (no silent under-declaring).
    vmem_limit = int(max(min(budget, est + (2 << 20)), est + (1 << 20), 16 << 20))

    grid = (_cdiv(B, TB), _cdiv(HW, THW))
    mask_hw = (HW % THW) != 0

    kernel = partial(_mlp_head_kernel, hw=HW, inv_hw=1.0 / float(HW),
                     inv_hidden=1.0 / float(hidden), mask_hw=mask_hw)

    # NOTE(v7x): when _cdiv(B, TB) == 1 the "parallel" axis has one grid point
    # and the second TensorCore idles; splitting the H*W axis per core with
    # partial accumulators would roughly double pooling bandwidth there.

    def _invoke(const_mode):
        kw = {} if const_mode is None else dict(pipeline_mode=const_mode)
        grid_spec = pltpu.PrefetchScalarGridSpec(
            num_scalar_prefetch=0,
            grid=grid,
            in_specs=[
                # Streamed activation tiles (default double-buffered; on v7x
                # with spare VMEM, pipeline_mode=pl.Buffered(3) would hide the
                # epilogue behind the next batch tile's prefetch).
                pl.BlockSpec((TB, C, THW), lambda b, s: (b, 0, s)),
                # Constant-index (resident) weights / affine: single-buffered.
                pl.BlockSpec((C, hidden), lambda b, s: (0, 0), **kw),
                pl.BlockSpec((1, hidden), lambda b, s: (0, 0), **kw),
                pl.BlockSpec((1, hidden), lambda b, s: (0, 0), **kw),
                pl.BlockSpec((1, hidden), lambda b, s: (0, 0), **kw),
                pl.BlockSpec((hidden, NC_pad), lambda b, s: (0, 0), **kw),
                pl.BlockSpec((1, NC_pad), lambda b, s: (0, 0), **kw),
            ],
            out_specs=pl.BlockSpec((TB, NC_pad), lambda b, s: (b, 0)),
            scratch_shapes=[pltpu.VMEM((TB, C), jnp.float32)],
        )
        return pl.pallas_call(
            kernel,
            out_shape=jax.ShapeDtypeStruct((B, NC_pad), jnp.float32),
            grid_spec=grid_spec,
            compiler_params=pltpu.CompilerParams(
                dimension_semantics=("parallel", "arbitrary"),
                vmem_limit_bytes=vmem_limit,
            ),
        )(x, w1, b1, gamma, beta, w2, b2)

    if _SINGLE_BUFFER_WEIGHTS_OK:
        try:
            out = _invoke(pl.Buffered(1))
        except Exception:
            _SINGLE_BUFFER_WEIGHTS_OK = False
            out = _invoke(None)
    else:
        out = _invoke(None)

    return out[:, :num_classes]


def init_params(key, in_features, num_classes, mlp_ratio=3):
    """Synthetic parameters matching the module's shapes (Linear stored (in, out))."""
    hidden = int(mlp_ratio * in_features)
    k1, k2, k3, k4, k5, k6 = jax.random.split(key, 6)
    w1 = jax.random.normal(k1, (in_features, hidden), jnp.float32) * 0.05
    b1 = jax.random.normal(k2, (1, hidden), jnp.float32) * 0.05
    w2 = jax.random.normal(k3, (hidden, num_classes), jnp.float32) * 0.05
    b2 = jax.random.normal(k4, (1, num_classes), jnp.float32) * 0.05
    # Non-trivial LayerNorm affine so the gamma/beta path is genuinely exercised.
    gamma = 1.0 + 0.1 * jax.random.normal(k5, (1, hidden), jnp.float32)
    beta = 0.1 * jax.random.normal(k6, (1, hidden), jnp.float32)
    return dict(w1=w1, b1=b1, gamma=gamma, beta=beta, w2=w2, b2=b2)


def reference_forward(x_nchw, params):
    """Pure-JAX reference of the PyTorch forward (pre_logits=False)."""
    hi = jax.lax.Precision.HIGHEST
    pooled = jnp.mean(x_nchw.astype(jnp.float32), axis=(2, 3))      # pool + flatten
    h = jnp.dot(pooled, params["w1"], precision=hi) + params["b1"][0]   # fc1
    h = jax.nn.gelu(h, approximate=False)                           # exact GELU
    mu = jnp.mean(h, axis=-1, keepdims=True)
    var = jnp.mean((h - mu) ** 2, axis=-1, keepdims=True)
    h = (h - mu) / jnp.sqrt(var + 1e-6)
    h = h * params["gamma"][0] + params["beta"][0]                  # LayerNorm
    return jnp.dot(h, params["w2"], precision=hi) + params["b2"][0]     # fc2


if __name__ == "__main__":
    key = jax.random.PRNGKey(0)
    kx, kx2, kp = jax.random.split(key, 3)

    B, C, H, W = 2, 16, 16, 16
    num_classes = 10
    x = jax.random.normal(kx, (B, C, H, W), jnp.float32)
    params = init_params(kp, in_features=C, num_classes=num_classes, mlp_ratio=3)
    ref = reference_forward(x, params)

    # Tolerances accommodate MXU matmul pass-decomposition differences vs the
    # XLA HIGHEST-precision reference (well above any real structural bug).
    TOL = dict(atol=2e-2, rtol=2e-2)

    # 1) f32 weights, single H*W tile.
    out = jax.block_until_ready(
        mlp_classifier_head(x, params, weight_dtype=jnp.float32))
    assert out.shape == (B, num_classes)
    assert jnp.allclose(out, ref, **TOL), "f32 kernel mismatch"

    # 2) f32 weights, forced H*W tiling (multiple pooling steps through the
    #    VMEM accumulator).
    out_tiled = jax.block_until_ready(
        mlp_classifier_head(x, params, weight_dtype=jnp.float32,
                            x_tile_bytes=16 * 1024))
    assert jnp.allclose(out_tiled, ref, **TOL), "tiled-pool kernel mismatch"

    # 3) Ragged H*W (18x18 = 324 -> partial last tile masked in-kernel).
    x_odd = jax.random.normal(kx2, (B, C, 18, 18), jnp.float32)
    ref_odd = reference_forward(x_odd, params)
    out_odd = jax.block_until_ready(
        mlp_classifier_head(x_odd, params, weight_dtype=jnp.float32,
                            x_tile_bytes=16 * 1024))
    assert jnp.allclose(out_odd, ref_odd, **TOL), "masked-tail kernel mismatch"

    # 4) Default path (bf16 weights): sanity check only.
    out_bf16 = jax.block_until_ready(mlp_classifier_head(x, params))
    assert out_bf16.shape == (B, num_classes)
    assert bool(jnp.all(jnp.isfinite(out_bf16)))
    assert jnp.allclose(out_bf16, ref, atol=1e-1, rtol=1e-1), "bf16 kernel too far off"

    print("KERNEL_OK")
</pallas_src>

<mosaic_0001>
module attributes {stable_mosaic.version = 11 : i64} {
  func.func @_mlp_head_kernel(%arg0: i32, %arg1: i32, %arg2: memref<2x16x256xf32, #tpu.memory_space<vmem>>, %arg3: memref<16x48xf32, #tpu.memory_space<vmem>>, %arg4: memref<1x48xf32, #tpu.memory_space<vmem>>, %arg5: memref<1x48xf32, #tpu.memory_space<vmem>>, %arg6: memref<1x48xf32, #tpu.memory_space<vmem>>, %arg7: memref<48x128xf32, #tpu.memory_space<vmem>>, %arg8: memref<1x128xf32, #tpu.memory_space<vmem>>, %arg9: memref<2x128xf32, #tpu.memory_space<vmem>>, %arg10: memref<2x16xf32, #tpu.memory_space<vmem>>) attributes {dimension_semantics = [#tpu.dimension_semantics<parallel>, #tpu.dimension_semantics<arbitrary>], iteration_bounds = array<i64: 1, 1>, scalar_prefetch = 0 : i64, scratch_operands = 1 : i64, tpu.core_type = #tpu.core_type<tc>, window_params = [{transform_indices = @transform_0, window_bounds = array<i64: 2, 16, 256>}, {pipeline_mode = #tpu.pipeline_mode<synchronous>, transform_indices = @transform_1, window_bounds = array<i64: 16, 48>}, {pipeline_mode = #tpu.pipeline_mode<synchronous>, transform_indices = @transform_2, window_bounds = array<i64: 1, 48>}, {pipeline_mode = #tpu.pipeline_mode<synchronous>, transform_indices = @transform_3, window_bounds = array<i64: 1, 48>}, {pipeline_mode = #tpu.pipeline_mode<synchronous>, transform_indices = @transform_4, window_bounds = array<i64: 1, 48>}, {pipeline_mode = #tpu.pipeline_mode<synchronous>, transform_indices = @transform_5, window_bounds = array<i64: 48, 128>}, {pipeline_mode = #tpu.pipeline_mode<synchronous>, transform_indices = @transform_6, window_bounds = array<i64: 1, 128>}, {transform_indices = @transform_7, window_bounds = array<i64: 2, 128>}]} {
    %c0_i32 = arith.constant 0 : i32
    %0 = arith.cmpi eq, %arg1, %c0_i32 : i32
    %1 = arith.extui %0 : i1 to i32
    %c0_i32_0 = arith.constant 0 : i32
    %2 = arith.cmpi ne, %1, %c0_i32_0 : i32
    scf.if %2 {
      %cst_9 = arith.constant 0.000000e+00 : f32
      %11 = vector.broadcast %cst_9 : f32 to vector<2x16xf32>
      %c0_10 = arith.constant 0 : index
      %c0_11 = arith.constant 0 : index
      %12 = vector.load %arg10[%c0_10, %c0_11] : memref<2x16xf32, #tpu.memory_space<vmem>>, vector<2x16xf32>
      tpu.vector_store %arg10[%c0_10, %c0_11], %11 {strides = array<i32>} : memref<2x16xf32, #tpu.memory_space<vmem>>, vector<2x16xf32>,
    } else {
    }
    %c0 = arith.constant 0 : index
    %c0_1 = arith.constant 0 : index
    %c0_2 = arith.constant 0 : index
    %3 = vector.load %arg2[%c0, %c0_1, %c0_2] : memref<2x16x256xf32, #tpu.memory_space<vmem>>, vector<2x16x256xf32>
    %c0_3 = arith.constant 0 : index
    %c0_4 = arith.constant 0 : index
    %4 = vector.load %arg10[%c0_3, %c0_4] : memref<2x16xf32, #tpu.memory_space<vmem>>, vector<2x16xf32>
    %cst = arith.constant dense<0.000000e+00> : vector<2x16xf32>
    %5 = vector.multi_reduction <add>, %3, %cst [2] : vector<2x16x256xf32> to vector<2x16xf32>
    %6 = arith.addf %4, %5 : vector<2x16xf32>
    %c0_5 = arith.constant 0 : index
    %c0_6 = arith.constant 0 : index
    %7 = vector.load %arg10[%c0_5, %c0_6] : memref<2x16xf32, #tpu.memory_space<vmem>>, vector<2x16xf32>
    tpu.vector_store %arg10[%c0_5, %c0_6], %6 {strides = array<i32>} : memref<2x16xf32, #tpu.memory_space<vmem>>, vector<2x16xf32>,
    %c0_i32_7 = arith.constant 0 : i32
    %8 = arith.cmpi eq, %arg1, %c0_i32_7 : i32
    %9 = arith.extui %8 : i1 to i32
    %c0_i32_8 = arith.constant 0 : i32
    %10 = arith.cmpi ne, %9, %c0_i32_8 : i32
    scf.if %10 {
      %c0_9 = arith.constant 0 : index
      %c0_10 = arith.constant 0 : index
      %11 = vector.load %arg10[%c0_9, %c0_10] : memref<2x16xf32, #tpu.memory_space<vmem>>, vector<2x16xf32>
      %cst_11 = arith.constant 3.906250e-03 : f32
      %12 = vector.broadcast %cst_11 : f32 to vector<2x16xf32>
      %13 = arith.mulf %11, %12 : vector<2x16xf32>
      %c0_12 = arith.constant 0 : index
      %c0_13 = arith.constant 0 : index
      %14 = vector.load %arg3[%c0_12, %c0_13] : memref<16x48xf32, #tpu.memory_space<vmem>>, vector<16x48xf32>
      %cst_14 = arith.constant dense<0.000000e+00> : vector<2x48xf32>
      %15 = tpu.matmul %13, %14, %cst_14 {dimension_numbers = #tpu.dot_dimension_numbers<[1], [0], [0], [1], [0, 0, 1, 1], [], []>} : vector<2x16xf32>, vector<16x48xf32>, vector<2x48xf32> -> vector<2x48xf32>
      %c0_15 = arith.constant 0 : index
      %c0_16 = arith.constant 0 : index
      %16 = vector.load %arg4[%c0_15, %c0_16] : memref<1x48xf32, #tpu.memory_space<vmem>>, vector<1x48xf32>
      %17 = vector.broadcast %16 : vector<1x48xf32> to vector<2x48xf32>
      %18 = arith.addf %15, %17 : vector<2x48xf32>
      %cst_17 = arith.constant 5.000000e-01 : f32
      %19 = vector.broadcast %cst_17 : f32 to vector<2x48xf32>
      %20 = arith.mulf %19, %18 : vector<2x48xf32>
      %cst_18 = arith.constant 0.707106769 : f32
      %21 = vector.broadcast %cst_18 : f32 to vector<2x48xf32>
      %22 = arith.mulf %18, %21 : vector<2x48xf32>
      %23 = math.absf %22 : vector<2x48xf32>
      %cst_19 = arith.constant 0.327591091 : f32
      %24 = vector.broadcast %cst_19 : f32 to vector<2x48xf32>
      %25 = arith.mulf %24, %23 : vector<2x48xf32>
      %cst_20 = arith.constant 1.000000e+00 : f32
      %26 = vector.broadcast %cst_20 : f32 to vector<2x48xf32>
      %27 = arith.addf %26, %25 : vector<2x48xf32>
      %cst_21 = arith.constant 1.000000e+00 : f32
      %28 = vector.broadcast %cst_21 : f32 to vector<2x48xf32>
      %29 = arith.divf %28, %27 : vector<2x48xf32>
      %cst_22 = arith.constant 1.06140542 : f32
      %30 = vector.broadcast %cst_22 : f32 to vector<2x48xf32>
      %31 = arith.mulf %29, %30 : vector<2x48xf32>
      %cst_23 = arith.constant -1.45315206 : f32
      %32 = vector.broadcast %cst_23 : f32 to vector<2x48xf32>
      %33 = arith.addf %32, %31 : vector<2x48xf32>
      %34 = arith.mulf %29, %33 : vector<2x48xf32>
      %cst_24 = arith.constant 1.42141378 : f32
      %35 = vector.broadcast %cst_24 : f32 to vector<2x48xf32>
      %36 = arith.addf %35, %34 : vector<2x48xf32>
      %37 = arith.mulf %29, %36 : vector<2x48xf32>
      %cst_25 = arith.constant -0.284496725 : f32
      %38 = vector.broadcast %cst_25 : f32 to vector<2x48xf32>
      %39 = arith.addf %38, %37 : vector<2x48xf32>
      %40 = arith.mulf %29, %39 : vector<2x48xf32>
      %cst_26 = arith.constant 0.254829586 : f32
      %41 = vector.broadcast %cst_26 : f32 to vector<2x48xf32>
      %42 = arith.addf %41, %40 : vector<2x48xf32>
      %43 = arith.mulf %29, %42 : vector<2x48xf32>
      %cst_27 = arith.constant 0.000000e+00 : f32
      %44 = vector.broadcast %cst_27 : f32 to vector<2x48xf32>
      %45 = arith.subf %44, %23 : vector<2x48xf32>
      %46 = arith.mulf %45, %23 : vector<2x48xf32>
      %47 = math.exp %46 : vector<2x48xf32>
      %48 = arith.mulf %43, %47 : vector<2x48xf32>
      %cst_28 = arith.constant 1.000000e+00 : f32
      %49 = vector.broadcast %cst_28 : f32 to vector<2x48xf32>
      %50 = arith.subf %49, %48 : vector<2x48xf32>
      %cst_29 = arith.constant 0.000000e+00 : f32
      %51 = vector.broadcast %cst_29 : f32 to vector<2x48xf32>
      %52 = arith.cmpf olt, %22, %51 : vector<2x48xf32>
      %cst_30 = arith.constant 0.000000e+00 : f32
      %53 = vector.broadcast %cst_30 : f32 to vector<2x48xf32>
      %54 = arith.subf %53, %50 : vector<2x48xf32>
      %55 = arith.select %52, %54, %50 : vector<2x48xi1>, vector<2x48xf32>
      %cst_31 = arith.constant 1.000000e+00 : f32
      %56 = vector.broadcast %cst_31 : f32 to vector<2x48xf32>
      %57 = arith.addf %56, %55 : vector<2x48xf32>
      %58 = arith.mulf %20, %57 : vector<2x48xf32>
      %cst_32 = arith.constant dense<0.000000e+00> : vector<2xf32>
      %59 = vector.multi_reduction <add>, %58, %cst_32 [1] : vector<2x48xf32> to vector<2xf32>
      %60 = vector.shape_cast %59 : vector<2xf32> to vector<2x1xf32>
      %cst_33 = arith.constant 0.020833334 : f32
      %61 = vector.broadcast %cst_33 : f32 to vector<2x1xf32>
      %62 = arith.mulf %60, %61 : vector<2x1xf32>
      %63 = vector.broadcast %62 : vector<2x1xf32> to vector<2x48xf32>
      %64 = arith.subf %58, %63 : vector<2x48xf32>
      %65 = arith.mulf %64, %64 : vector<2x48xf32>
      %cst_34 = arith.constant dense<0.000000e+00> : vector<2xf32>
      %66 = vector.multi_reduction <add>, %65, %cst_34 [1] : vector<2x48xf32> to vector<2xf32>
      %67 = vector.shape_cast %66 : vector<2xf32> to vector<2x1xf32>
      %cst_35 = arith.constant 0.020833334 : f32
      %68 = vector.broadcast %cst_35 : f32 to vector<2x1xf32>
      %69 = arith.mulf %67, %68 : vector<2x1xf32>
      %cst_36 = arith.constant 9.99999997E-7 : f32
      %70 = vector.broadcast %cst_36 : f32 to vector<2x1xf32>
      %71 = arith.addf %69, %70 : vector<2x1xf32>
      %72 = math.rsqrt %71 : vector<2x1xf32>
      %73 = vector.broadcast %72 : vector<2x1xf32> to vector<2x48xf32>
      %74 = arith.mulf %64, %73 : vector<2x48xf32>
      %c0_37 = arith.constant 0 : index
      %c0_38 = arith.constant 0 : index
      %75 = vector.load %arg5[%c0_37, %c0_38] : memref<1x48xf32, #tpu.memory_space<vmem>>, vector<1x48xf32>
      %76 = vector.broadcast %75 : vector<1x48xf32> to vector<2x48xf32>
      %77 = arith.mulf %74, %76 : vector<2x48xf32>
      %c0_39 = arith.constant 0 : index
      %c0_40 = arith.constant 0 : index
      %78 = vector.load %arg6[%c0_39, %c0_40] : memref<1x48xf32, #tpu.memory_space<vmem>>, vector<1x48xf32>
      %79 = vector.broadcast %78 : vector<1x48xf32> to vector<2x48xf32>
      %80 = arith.addf %77, %79 : vector<2x48xf32>
      %c0_41 = arith.constant 0 : index
      %c0_42 = arith.constant 0 : index
      %81 = vector.load %arg7[%c0_41, %c0_42] : memref<48x128xf32, #tpu.memory_space<vmem>>, vector<48x128xf32>
      %cst_43 = arith.constant dense<0.000000e+00> : vector<2x128xf32>
      %82 = tpu.matmul %80, %81, %cst_43 {dimension_numbers = #tpu.dot_dimension_numbers<[1], [0], [0], [1], [0, 0, 1, 1], [], []>} : vector<2x48xf32>, vector<48x128xf32>, vector<2x128xf32> -> vector<2x128xf32>
      %c0_44 = arith.constant 0 : index
      %c0_45 = arith.constant 0 : index
      %83 = vector.load %arg8[%c0_44, %c0_45] : memref<1x128xf32, #tpu.memory_space<vmem>>, vector<1x128xf32>
      %84 = vector.broadcast %83 : vector<1x128xf32> to vector<2x128xf32>
      %85 = arith.addf %82, %84 : vector<2x128xf32>
      %c0_46 = arith.constant 0 : index
      %c0_47 = arith.constant 0 : index
      %86 = vector.load %arg9[%c0_46, %c0_47] : memref<2x128xf32, #tpu.memory_space<vmem>>, vector<2x128xf32>
      tpu.vector_store %arg9[%c0_46, %c0_47], %85 {strides = array<i32>} : memref<2x128xf32, #tpu.memory_space<vmem>>, vector<2x128xf32>,
    } else {
    }
    return
  }
  func.func @transform_0(%arg0: i32, %arg1: i32) -> (i32, i32, i32) {
    %c0_i32 = arith.constant 0 : i32
    %c0_i32_0 = arith.constant 0 : i32
    return %arg0, %c0_i32, %arg1 : i32, i32, i32
  }
  func.func @transform_1(%arg0: i32, %arg1: i32) -> (i32, i32) {
    %c0_i32 = arith.constant 0 : i32
    %c0_i32_0 = arith.constant 0 : i32
    %c0_i32_1 = arith.constant 0 : i32
    return %c0_i32, %c0_i32_0 : i32, i32
  }
  func.func @transform_2(%arg0: i32, %arg1: i32) -> (i32, i32) {
    %c0_i32 = arith.constant 0 : i32
    %c0_i32_0 = arith.constant 0 : i32
    %c0_i32_1 = arith.constant 0 : i32
    return %c0_i32, %c0_i32_0 : i32, i32
  }
  func.func @transform_3(%arg0: i32, %arg1: i32) -> (i32, i32) {
    %c0_i32 = arith.constant 0 : i32
    %c0_i32_0 = arith.constant 0 : i32
    %c0_i32_1 = arith.constant 0 : i32
    return %c0_i32, %c0_i32_0 : i32, i32
  }
  func.func @transform_4(%arg0: i32, %arg1: i32) -> (i32, i32) {
    %c0_i32 = arith.constant 0 : i32
    %c0_i32_0 = arith.constant 0 : i32
    %c0_i32_1 = arith.constant 0 : i32
    return %c0_i32, %c0_i32_0 : i32, i32
  }
  func.func @transform_5(%arg0: i32, %arg1: i32) -> (i32, i32) {
    %c0_i32 = arith.constant 0 : i32
    %c0_i32_0 = arith.constant 0 : i32
    %c0_i32_1 = arith.constant 0 : i32
    return %c0_i32, %c0_i32_0 : i32, i32
  }
  func.func @transform_6(%arg0: i32, %arg1: i32) -> (i32, i32) {
    %c0_i32 = arith.constant 0 : i32
    %c0_i32_0 = arith.constant 0 : i32
    %c0_i32_1 = arith.constant 0 : i32
    return %c0_i32, %c0_i32_0 : i32, i32
  }
  func.func @transform_7(%arg0: i32, %arg1: i32) -> (i32, i32) {
    %c0_i32 = arith.constant 0 : i32
    %c0_i32_0 = arith.constant 0 : i32
    return %arg0, %c0_i32 : i32, i32
  }
}

module attributes {stable_mosaic.version = 11 : i64} {
  func.func @_mlp_head_kernel(%arg0: i32, %arg1: i32, %arg2: memref<2x16x256xf32, #tpu.memory_space<vmem>>, %arg3: memref<16x48xf32, #tpu.memory_space<vmem>>, %arg4: memref<1x48xf32, #tpu.memory_space<vmem>>, %arg5: memref<1x48xf32, #tpu.memory_space<vmem>>, %arg6: memref<1x48xf32, #tpu.memory_space<vmem>>, %arg7: memref<48x128xf32, #tpu.memory_space<vmem>>, %arg8: memref<1x128xf32, #tpu.memory_space<vmem>>, %arg9: memref<2x128xf32, #tpu.memory_space<vmem>>, %arg10: memref<2x16xf32, #tpu.memory_space<vmem>>) attributes {dimension_semantics = [#tpu.dimension_semantics<parallel>, #tpu.dimension_semantics<arbitrary>], iteration_bounds = array<i64: 1, 1>, scalar_prefetch = 0 : i64, scratch_operands = 1 : i64, tpu.core_type = #tpu.core_type<tc>, window_params = [{transform_indices = @transform_0, window_bounds = array<i64: 2, 16, 256>}, {pipeline_mode = #tpu.pipeline_mode<synchronous>, transform_indices = @transform_1, window_bounds = array<i64: 16, 48>}, {pipeline_mode = #tpu.pipeline_mode<synchronous>, transform_indices = @transform_2, window_bounds = array<i64: 1, 48>}, {pipeline_mode = #tpu.pipeline_mode<synchronous>, transform_indices = @transform_3, window_bounds = array<i64: 1, 48>}, {pipeline_mode = #tpu.pipeline_mode<synchronous>, transform_indices = @transform_4, window_bounds = array<i64: 1, 48>}, {pipeline_mode = #tpu.pipeline_mode<synchronous>, transform_indices = @transform_5, window_bounds = array<i64: 48, 128>}, {pipeline_mode = #tpu.pipeline_mode<synchronous>, transform_indices = @transform_6, window_bounds = array<i64: 1, 128>}, {transform_indices = @transform_7, window_bounds = array<i64: 2, 128>}]} {
    %c0_i32 = arith.constant 0 : i32
    %0 = arith.cmpi eq, %arg1, %c0_i32 : i32
    %1 = arith.extui %0 : i1 to i32
    %c0_i32_0 = arith.constant 0 : i32
    %2 = arith.cmpi ne, %1, %c0_i32_0 : i32
    scf.if %2 {
      %cst_9 = arith.constant 0.000000e+00 : f32
      %11 = vector.broadcast %cst_9 : f32 to vector<2x16xf32>
      %c0_10 = arith.constant 0 : index
      %c0_11 = arith.constant 0 : index
      %12 = vector.load %arg10[%c0_10, %c0_11] : memref<2x16xf32, #tpu.memory_space<vmem>>, vector<2x16xf32>
      tpu.vector_store %arg10[%c0_10, %c0_11], %11 {strides = array<i32>} : memref<2x16xf32, #tpu.memory_space<vmem>>, vector<2x16xf32>,
    } else {
    }
    %c0 = arith.constant 0 : index
    %c0_1 = arith.constant 0 : index
    %c0_2 = arith.constant 0 : index
    %3 = vector.load %arg2[%c0, %c0_1, %c0_2] : memref<2x16x256xf32, #tpu.memory_space<vmem>>, vector<2x16x256xf32>
    %c0_3 = arith.constant 0 : index
    %c0_4 = arith.constant 0 : index
    %4 = vector.load %arg10[%c0_3, %c0_4] : memref<2x16xf32, #tpu.memory_space<vmem>>, vector<2x16xf32>
    %cst = arith.constant dense<0.000000e+00> : vector<2x16xf32>
    %5 = vector.multi_reduction <add>, %3, %cst [2] : vector<2x16x256xf32> to vector<2x16xf32>
    %6 = arith.addf %4, %5 : vector<2x16xf32>
    %c0_5 = arith.constant 0 : index
    %c0_6 = arith.constant 0 : index
    %7 = vector.load %arg10[%c0_5, %c0_6] : memref<2x16xf32, #tpu.memory_space<vmem>>, vector<2x16xf32>
    tpu.vector_store %arg10[%c0_5, %c0_6], %6 {strides = array<i32>} : memref<2x16xf32, #tpu.memory_space<vmem>>, vector<2x16xf32>,
    %c0_i32_7 = arith.constant 0 : i32
    %8 = arith.cmpi eq, %arg1, %c0_i32_7 : i32
    %9 = arith.extui %8 : i1 to i32
    %c0_i32_8 = arith.constant 0 : i32
    %10 = arith.cmpi ne, %9, %c0_i32_8 : i32
    scf.if %10 {
      %c0_9 = arith.constant 0 : index
      %c0_10 = arith.constant 0 : index
      %11 = vector.load %arg10[%c0_9, %c0_10] : memref<2x16xf32, #tpu.memory_space<vmem>>, vector<2x16xf32>
      %cst_11 = arith.constant 3.906250e-03 : f32
      %12 = vector.broadcast %cst_11 : f32 to vector<2x16xf32>
      %13 = arith.mulf %11, %12 : vector<2x16xf32>
      %c0_12 = arith.constant 0 : index
      %c0_13 = arith.constant 0 : index
      %14 = vector.load %arg3[%c0_12, %c0_13] : memref<16x48xf32, #tpu.memory_space<vmem>>, vector<16x48xf32>
      %cst_14 = arith.constant dense<0.000000e+00> : vector<2x48xf32>
      %15 = tpu.matmul %13, %14, %cst_14 {dimension_numbers = #tpu.dot_dimension_numbers<[1], [0], [0], [1], [0, 0, 1, 1], [], []>} : vector<2x16xf32>, vector<16x48xf32>, vector<2x48xf32> -> vector<2x48xf32>
      %c0_15 = arith.constant 0 : index
      %c0_16 = arith.constant 0 : index
      %16 = vector.load %arg4[%c0_15, %c0_16] : memref<1x48xf32, #tpu.memory_space<vmem>>, vector<1x48xf32>
      %17 = vector.broadcast %16 : vector<1x48xf32> to vector<2x48xf32>
      %18 = arith.addf %15, %17 : vector<2x48xf32>
      %cst_17 = arith.constant 5.000000e-01 : f32
      %19 = vector.broadcast %cst_17 : f32 to vector<2x48xf32>
      %20 = arith.mulf %19, %18 : vector<2x48xf32>
      %cst_18 = arith.constant 0.707106769 : f32
      %21 = vector.broadcast %cst_18 : f32 to vector<2x48xf32>
      %22 = arith.mulf %18, %21 : vector<2x48xf32>
      %23 = math.absf %22 : vector<2x48xf32>
      %cst_19 = arith.constant 0.327591091 : f32
      %24 = vector.broadcast %cst_19 : f32 to vector<2x48xf32>
      %25 = arith.mulf %24, %23 : vector<2x48xf32>
      %cst_20 = arith.constant 1.000000e+00 : f32
      %26 = vector.broadcast %cst_20 : f32 to vector<2x48xf32>
      %27 = arith.addf %26, %25 : vector<2x48xf32>
      %cst_21 = arith.constant 1.000000e+00 : f32
      %28 = vector.broadcast %cst_21 : f32 to vector<2x48xf32>
      %29 = arith.divf %28, %27 : vector<2x48xf32>
      %cst_22 = arith.constant 1.06140542 : f32
      %30 = vector.broadcast %cst_22 : f32 to vector<2x48xf32>
      %31 = arith.mulf %29, %30 : vector<2x48xf32>
      %cst_23 = arith.constant -1.45315206 : f32
      %32 = vector.broadcast %cst_23 : f32 to vector<2x48xf32>
      %33 = arith.addf %32, %31 : vector<2x48xf32>
      %34 = arith.mulf %29, %33 : vector<2x48xf32>
      %cst_24 = arith.constant 1.42141378 : f32
      %35 = vector.broadcast %cst_24 : f32 to vector<2x48xf32>
      %36 = arith.addf %35, %34 : vector<2x48xf32>
      %37 = arith.mulf %29, %36 : vector<2x48xf32>
      %cst_25 = arith.constant -0.284496725 : f32
      %38 = vector.broadcast %cst_25 : f32 to vector<2x48xf32>
      %39 = arith.addf %38, %37 : vector<2x48xf32>
      %40 = arith.mulf %29, %39 : vector<2x48xf32>
      %cst_26 = arith.constant 0.254829586 : f32
      %41 = vector.broadcast %cst_26 : f32 to vector<2x48xf32>
      %42 = arith.addf %41, %40 : vector<2x48xf32>
      %43 = arith.mulf %29, %42 : vector<2x48xf32>
      %cst_27 = arith.constant 0.000000e+00 : f32
      %44 = vector.broadcast %cst_27 : f32 to vector<2x48xf32>
      %45 = arith.subf %44, %23 : vector<2x48xf32>
      %46 = arith.mulf %45, %23 : vector<2x48xf32>
      %47 = math.exp %46 : vector<2x48xf32>
      %48 = arith.mulf %43, %47 : vector<2x48xf32>
      %cst_28 = arith.constant 1.000000e+00 : f32
      %49 = vector.broadcast %cst_28 : f32 to vector<2x48xf32>
      %50 = arith.subf %49, %48 : vector<2x48xf32>
      %cst_29 = arith.constant 0.000000e+00 : f32
      %51 = vector.broadcast %cst_29 : f32 to vector<2x48xf32>
      %52 = arith.cmpf olt, %22, %51 : vector<2x48xf32>
      %cst_30 = arith.constant 0.000000e+00 : f32
      %53 = vector.broadcast %cst_30 : f32 to vector<2x48xf32>
      %54 = arith.subf %53, %50 : vector<2x48xf32>
      %55 = arith.select %52, %54, %50 : vector<2x48xi1>, vector<2x48xf32>
      %cst_31 = arith.constant 1.000000e+00 : f32
      %56 = vector.broadcast %cst_31 : f32 to vector<2x48xf32>
      %57 = arith.addf %56, %55 : vector<2x48xf32>
      %58 = arith.mulf %20, %57 : vector<2x48xf32>
      %cst_32 = arith.constant dense<0.000000e+00> : vector<2xf32>
      %59 = vector.multi_reduction <add>, %58, %cst_32 [1] : vector<2x48xf32> to vector<2xf32>
      %60 = vector.shape_cast %59 : vector<2xf32> to vector<2x1xf32>
      %cst_33 = arith.constant 0.020833334 : f32
      %61 = vector.broadcast %cst_33 : f32 to vector<2x1xf32>
      %62 = arith.mulf %60, %61 : vector<2x1xf32>
      %63 = vector.broadcast %62 : vector<2x1xf32> to vector<2x48xf32>
      %64 = arith.subf %58, %63 : vector<2x48xf32>
      %65 = arith.mulf %64, %64 : vector<2x48xf32>
      %cst_34 = arith.constant dense<0.000000e+00> : vector<2xf32>
      %66 = vector.multi_reduction <add>, %65, %cst_34 [1] : vector<2x48xf32> to vector<2xf32>
      %67 = vector.shape_cast %66 : vector<2xf32> to vector<2x1xf32>
      %cst_35 = arith.constant 0.020833334 : f32
      %68 = vector.broadcast %cst_35 : f32 to vector<2x1xf32>
      %69 = arith.mulf %67, %68 : vector<2x1xf32>
      %cst_36 = arith.constant 9.99999997E-7 : f32
      %70 = vector.broadcast %cst_36 : f32 to vector<2x1xf32>
      %71 = arith.addf %69, %70 : vector<2x1xf32>
      %72 = math.rsqrt %71 : vector<2x1xf32>
      %73 = vector.broadcast %72 : vector<2x1xf32> to vector<2x48xf32>
      %74 = arith.mulf %64, %73 : vector<2x48xf32>
      %c0_37 = arith.constant 0 : index
      %c0_38 = arith.constant 0 : index
      %75 = vector.load %arg5[%c0_37, %c0_38] : memref<1x48xf32, #tpu.memory_space<vmem>>, vector<1x48xf32>
      %76 = vector.broadcast %75 : vector<1x48xf32> to vector<2x48xf32>
      %77 = arith.mulf %74, %76 : vector<2x48xf32>
      %c0_39 = arith.constant 0 : index
      %c0_40 = arith.constant 0 : index
      %78 = vector.load %arg6[%c0_39, %c0_40] : memref<1x48xf32, #tpu.memory_space<vmem>>, vector<1x48xf32>
      %79 = vector.broadcast %78 : vector<1x48xf32> to vector<2x48xf32>
      %80 = arith.addf %77, %79 : vector<2x48xf32>
      %c0_41 = arith.constant 0 : index
      %c0_42 = arith.constant 0 : index
      %81 = vector.load %arg7[%c0_41, %c0_42] : memref<48x128xf32, #tpu.memory_space<vmem>>, vector<48x128xf32>
      %cst_43 = arith.constant dense<0.000000e+00> : vector<2x128xf32>
      %82 = tpu.matmul %80, %81, %cst_43 {dimension_numbers = #tpu.dot_dimension_numbers<[1], [0], [0], [1], [0, 0, 1, 1], [], []>} : vector<2x48xf32>, vector<48x128xf32>, vector<2x128xf32> -> vector<2x128xf32>
      %c0_44 = arith.constant 0 : index
      %c0_45 = arith.constant 0 : index
      %83 = vector.load %arg8[%c0_44, %c0_45] : memref<1x128xf32, #tpu.memory_space<vmem>>, vector<1x128xf32>
      %84 = vector.broadcast %83 : vector<1x128xf32> to vector<2x128xf32>
      %85 = arith.addf %82, %84 : vector<2x128xf32>
      %c0_46 = arith.constant 0 : index
      %c0_47 = arith.constant 0 : index
      %86 = vector.load %arg9[%c0_46, %c0_47] : memref<2x128xf32, #tpu.memory_space<vmem>>, vector<2x128xf32>
      tpu.vector_store %arg9[%c0_46, %c0_47], %85 {strides = array<i32>} : memref<2x128xf32, #tpu.memory_space<vmem>>, vector<2x128xf32>,
    } else {
    }
    return
  }
  func.func @transform_0(%arg0: i32, %arg1: i32) -> (i32, i32, i32) {
    %c0_i32 = arith.constant 0 : i32
    %c0_i32_0 = arith.constant 0 : i32
    return %arg0, %c0_i32, %arg1 : i32, i32, i32
  }
  func.func @transform_1(%arg0: i32, %arg1: i32) -> (i32, i32) {
    %c0_i32 = arith.constant 0 : i32
    %c0_i32_0 = arith.constant 0 : i32
    %c0_i32_1 = arith.constant 0 : i32
    return %c0_i32, %c0_i32_0 : i32, i32
  }
  func.func @transform_2(%arg0: i32, %arg1: i32) -> (i32, i32) {
    %c0_i32 = arith.constant 0 : i32
    %c0_i32_0 = arith.constant 0 : i32
    %c0_i32_1 = arith.constant 0 : i32
    return %c0_i32, %c0_i32_0 : i32, i32
  }
  func.func @transform_3(%arg0: i32, %arg1: i32) -> (i32, i32) {
    %c0_i32 = arith.constant 0 : i32
    %c0_i32_0 = arith.constant 0 : i32
    %c0_i32_1 = arith.constant 0 : i32
    return %c0_i32, %c0_i32_0 : i32, i32
  }
  func.func @transform_4(%arg0: i32, %arg1: i32) -> (i32, i32) {
    %c0_i32 = arith.constant 0 : i32
    %c0_i32_0 = arith.constant 0 : i32
    %c0_i32_1 = arith.constant 0 : i32
    return %c0_i32, %c0_i32_0 : i32, i32
  }
  func.func @transform_5(%arg0: i32, %arg1: i32) -> (i32, i32) {
    %c0_i32 = arith.constant 0 : i32
    %c0_i32_0 = arith.constant 0 : i32
    %c0_i32_1 = arith.constant 0 : i32
    return %c0_i32, %c0_i32_0 : i32, i32
  }
  func.func @transform_6(%arg0: i32, %arg1: i32) -> (i32, i32) {
    %c0_i32 = arith.constant 0 : i32
    %c0_i32_0 = arith.constant 0 : i32
    %c0_i32_1 = arith.constant 0 : i32
    return %c0_i32, %c0_i32_0 : i32, i32
  }
  func.func @transform_7(%arg0: i32, %arg1: i32) -> (i32, i32) {
    %c0_i32 = arith.constant 0 : i32
    %c0_i32_0 = arith.constant 0 : i32
    return %arg0, %c0_i32 : i32, i32
  }
}

</mosaic_0001>

<bundles_post_ra>
// kernel: tpu_custom_call.1
= control target key start
LH: loop header
LB: loop body
LE: loop exit
PB: predicated region body
PF: predicated region fallthrough
CT: control target
= control target key end

     0   :  { %12 = vsyncpa [#allocation4], 0  ;;  %s660_s0 = inlined_call_operand.hbm [shape: f32[2,16,256], index: 0, kind: input, shape index: {}]   ;;  %s661_s1 = inlined_call_operand.hbm [shape: f32[16,48], index: 1, kind: input, shape index: {}]   ;;  %s662_s2 = inlined_call_operand.vmem [shape: f32[1,48], index: 2, kind: input, shape index: {}]   ;;  %s663_s3 = inlined_call_operand.vmem [shape: f32[1,48], index: 3, kind: input, shape index: {}]   ;;  %s664_s4 = inlined_call_operand.vmem [shape: f32[1,48], index: 4, kind: input, shape index: {}]   ;;  %s665_s5 = inlined_call_operand.hbm [shape: f32[48,128], index: 5, kind: input, shape index: {}]   ;;  %s666_s6 = inlined_call_operand.vmem [shape: f32[1,128], index: 6, kind: input, shape index: {}]   ;;  %s667_s7 = inlined_call_operand.hbm [shape: f32[2,128], index: 7, kind: output, shape index: {}]  }
   0x1   :  { %13 = vsyncpa [#allocation7], 0 }
   0x2   :  { %14 = vsyncpa [#allocation5], 0  ;;  %s537_s24 = smov [#allocation6]   ;;  %s443_s28 = scalar_lea.hbm %s661_s1, 256 }
   0x3   :  { %s32_s25 = sshll.u32 %s537_s24, 4  ;;  %p444_p0 = scmp.ne.s32.totalorder %s661_s1, %s443_s28  ;;  %s33_s25 = int_to_ptr.vmem [resolvable:$true] %s32_s25 }
   0x4   :  { %p447_p1 = scmp.lt.u32.totalorder %s443_s28, %s661_s1 }
   0x6   :  { %p449_p2 = pnand %p447_p1, %p444_p0 }
   0x8   :  { %452 = shalt.err (!%p449_p2)
}
   0x9   :  { %s453_s10 = scalar_lea.vmem %s33_s25, 256  ;;  %p458_p4 = scmp.lt.s32.totalorder %s33_s25, %s33_s25 }
   0xa   :  { %p454_p3 = scmp.ne.s32.totalorder %s33_s25, %s453_s10  ;;  %p459_p5 = scmp.lt.s32.totalorder %s453_s10, %s453_s10 }
   0xc   :  { %p460_p6 = por %p459_p5, %p458_p4 }
   0xe   :  { %p461_p7 = pnand %p460_p6, %p454_p3 }
  0x10   :  { %464 = shalt.err (!%p461_p7)
}
  0x11   :  { %s538_s11 = smov 128   ;;  %s539_s12 = smov 8  }
  0x12   :  { %38 = dma.hbm_to_vmem [thread:$0]  %s661_s1, 256, %s33_s25, [#allocation7], %s538_s11, %s538_s11, %s539_s12  }
  0x13   :  { %s540_s15 = smov [#allocation3]   ;;  %s465_s19 = scalar_lea.hbm %s660_s0, 1024 }
  0x14   :  { %s20_s16 = sshll.u32 %s540_s15, 4  ;;  %p466_p8 = scmp.ne.s32.totalorder %s660_s0, %s465_s19  ;;  %s21_s16 = int_to_ptr.vmem [resolvable:$true] %s20_s16 }
  0x15   :  { %p469_p9 = scmp.lt.u32.totalorder %s465_s19, %s660_s0 }
  0x17   :  { %p471_p10 = pnand %p469_p9, %p466_p8 }
  0x19   :  { %474 = shalt.err (!%p471_p10)
}
  0x1a   :  { %s475_s24 = scalar_lea.vmem %s21_s16, 1024  ;;  %p480_p12 = scmp.lt.s32.totalorder %s21_s16, %s21_s16 }
  0x1b   :  { %p476_p11 = scmp.ne.s32.totalorder %s21_s16, %s475_s24  ;;  %p481_p13 = scmp.lt.s32.totalorder %s475_s24, %s475_s24 }
  0x1d   :  { %p482_p0 = por %p481_p13, %p480_p12 }
  0x1f   :  { %p483_p1 = pnand %p482_p0, %p476_p11 }
  0x21   :  { %486 = shalt.err (!%p483_p1)
}
  0x22   :  { %s541_s1 = smov 256   ;;  %s542_s25 = smov 16  }
  0x23   :  { %26 = dma.hbm_to_vmem [thread:$0]  %s660_s0, 1024, %s21_s16, [#allocation4], %s541_s1, %s541_s1, %s542_s25  }
  0x24   :  { %s543_s28 = smov [#allocation8]   ;;  %s487_s9 = scalar_lea.hbm %s665_s5, 768 }
  0x25   :  { %s50_s29 = sshll.u32 %s543_s28, 4  ;;  %p488_p2 = scmp.ne.s32.totalorder %s665_s5, %s487_s9  ;;  %s51_s29 = int_to_ptr.vmem [resolvable:$true] %s50_s29 }
  0x26   :  { %p491_p3 = scmp.lt.u32.totalorder %s487_s9, %s665_s5 }
  0x28   :  { %p493_p4 = pnand %p491_p3, %p488_p2 }
  0x2a   :  { %496 = shalt.err (!%p493_p4)
}
  0x2b   :  { %s497_s17 = scalar_lea.vmem %s51_s29, 768  ;;  %p502_p6 = scmp.lt.s32.totalorder %s51_s29, %s51_s29 }
  0x2c   :  { %p498_p5 = scmp.ne.s32.totalorder %s51_s29, %s497_s17  ;;  %p503_p7 = scmp.lt.s32.totalorder %s497_s17, %s497_s17 }
  0x2e   :  { %p504_p8 = por %p503_p7, %p502_p6 }
  0x30   :  { %p505_p9 = pnand %p504_p8, %p498_p5 }
  0x32   :  { %508 = shalt.err (!%p505_p9)
}
  0x33   :  { %56 = dma.hbm_to_vmem [thread:$0]  %s665_s5, 768, %s51_s29, [#allocation7], %s538_s11, %s538_s11, %s539_s12  }
  0x34   :  { %531 = dma.done.wait [#allocation4], 1024  }
  0x35   :  { %532 = vsyncadd [#allocation4], 4294966272 }
  0x36   :  { %533 = dma.done.wait [#allocation7], 1024  }
  0x37   :  { %534 = vsyncadd [#allocation7], 4294966272  ;;  %v78_v0 = vld [vmem:[#allocation3 + $0x20] sm:$0xff]  ;;  %v79_v1 = vld [vmem:[#allocation3 + $0x28] sm:$0xff]  ;;  %vm72_vm0 = vcmask 123904   ;;  %v544_v12 = vmov 0.0   ;;  %v99_v17 = vlaneseq }
  0x38   :  { %v74_v2 = vld [vmem:[#allocation3] sm:$0xff]  ;;  %v89_v3 = vadd.f32 %v79_v1, %v78_v0  ;;  %v75_v4 = vld [vmem:[#allocation3 + $0x8] sm:$0xff]  ;;  %v80_v5 = vld [vmem:[#allocation3 + $0x30] sm:$0xff]  ;;  %73 = vst.msk [vmem:[#allocation2] sm:$0x3] %vm72_vm0, %v544_v12  ;;  %v545_v15 = vmov 0.0|0.0  }
  0x39   :  { %v81_v6 = vld [vmem:[#allocation3 + $0x38] sm:$0xff]  ;;  %v83_v7 = vadd.f32 %v75_v4, %v74_v2  ;;  %v76_v8 = vld [vmem:[#allocation3 + $0x10] sm:$0xff]  ;;  %v132_v13 = vld [vmem:[#allocation6] sm:$0xff]  ;;  %414 = vmatprep.subr.bf16.mxu0 %v545_v15  ;;  %417 = vmatprep.subr.bf16.mxu1 %v545_v15  ;;  %vm546_vm1 = vmmov 0   ;;  %v100_v18 = vand.u32 127, %v99_v17  ;;  %v102_v19 = vshrl.u32 %v99_v17, 7 }
  0x3a   :  { %v77_v9 = vld [vmem:[#allocation3 + $0x18] sm:$0xff]  ;;  %90 = vadd.xlane.f32.xlu1 %v89_v3  ;;  %v92_v10 = vadd.f32 %v81_v6, %v80_v5  ;;  %v133_v14 = vld [vmem:[#allocation6 + $0x8] sm:$0xff]  ;;  %396 = vmatprep.mubr.msk.f32.mxu0 %vm546_vm1, %v544_v12  ;;  %vm110_vm2 = vcmask 130112   ;;  %vm121_vm3 = vcmask 1041409   ;;  %vm141_vm4 = vcmask 130048   ;;  %s547_s22 = smov [#allocation9]  }
  0x3b   :  { %84 = vadd.xlane.f32.xlu0 %v83_v7  ;;  %v86_v11 = vadd.f32 %v77_v9, %v76_v8  ;;  %v415_v16 = vpack.c.bf16 %v133_v14, %v132_v13  ;;  %411 = vmatprep.mubr.msk.f32.mxu1 %vm546_vm1, %v544_v12  ;;  %v105_v20 = vadd.s32 4294967288, %v100_v18  ;;  %v103_v22 = vsub.s32 %v100_v18, %v102_v19  ;;  %v376_v38 = vld [vmem:[%s662_s2] ss:$0 sm:$0xff]  ;;  %v272_v9 = vld [vmem:[#allocation8] sm:$0xff]  ;;  %v275_v13 = vld [vmem:[#allocation8 + $0x18] sm:$0xff]  ;;  %s366_s23 = sshll.u32 %s547_s22, 4  ;;  %s367_s23 = int_to_ptr.vmem [resolvable:$true] %s366_s23 }
  0x3c   :  { %vm242_vm6 = vcmask 386048   ;;  %v277_v17 = vld [vmem:[#allocation8 + $0x28] sm:$0xff]  ;;  %vm285_vm7 = vcmask 392192   ;;  %p514_p11 = scmp.lt.s32.totalorder %s367_s23, %s367_s23 }
  0x3d   :  { %416 = vmatpush3.bf16.msra.mxu0 %v415_v16  ;;  %v108_v24 = vsub.s32 %v105_v20, %v102_v19  ;;  %v276_v16 = vld [vmem:[#allocation8 + $0x20] sm:$0xff] }
  0x3e   :  { %93 = vadd.xlane.f32.xlu1 %v92_v10  ;;  %v273_v10 = vld [vmem:[#allocation8 + $0x8] sm:$0xff]  ;;  %v424_v18 = vpack.c.bf16 %v277_v17, %v276_v16 }
  0x3f   :  { %87 = vadd.xlane.f32.xlu0 %v86_v11  ;;  %v82_v32 = vld [vmem:[#allocation2] sm:$0x3]  ;;  %v274_v11 = vld [vmem:[#allocation8 + $0x10] sm:$0xff]  ;;  %v418_v12 = vpack.c.bf16 %v273_v10, %v272_v9 }
  0x40   :  { %v421_v14 = vpack.c.bf16 %v275_v13, %v274_v11 }
  0x41   :  { %419 = vmatpush3.bf16.msra.mxu1 %v418_v12 }
  0x42   :  { %420 = vmatprep.subr.bf16.mxu1 %v545_v15 }
  0x45   :  { %422 = vmatpush3.bf16.msra.mxu1 %v421_v14 }
  0x46   :  { %423 = vmatprep.subr.bf16.mxu1 %v545_v15  ;;  %v380_v15 = vld [vmem:[%s666_s6] ss:$0 sm:$0xff] }
  0x49   :  { %425 = vmatpush3.bf16.msra.mxu1 %v424_v18 }
  0xc7   :  { %v91_v21 = vpop.xlane.xlu1 %90 }
  0xc8   :  { %v85_v23 = vpop.xlane.xlu0 %84  ;;  %v115_v26 = vrot.slane %v91_v21, %v103_v22 }
  0xc9   :  { %v104_v29 = vrot.slane %v85_v23, %v103_v22  ;;  %v378_v23 = vld [vmem:[%s663_s3] ss:$0 sm:$0xff]  ;;  %s509_s3 = scalar_lea.vmem %s367_s23, 32 }
  0xca   :  { %p510_p10 = scmp.ne.s32.totalorder %s367_s23, %s509_s3  ;;  %p515_p12 = scmp.lt.s32.totalorder %s509_s3, %s509_s3 }
  0xcb   :  { %v94_v25 = vpop.xlane.xlu1 %93 }
  0xcc   :  { %v119_v27 = vrot.slane %v94_v25, %v108_v24  ;;  %v88_v28 = vpop.xlane.xlu0 %87  ;;  %v379_v25 = vld [vmem:[%s664_s4] ss:$0 sm:$0xff]  ;;  %p516_p13 = por %p515_p12, %p514_p11 }
  0xcd   :  { %v109_v30 = vrot.slane %v88_v28, %v108_v24 }
  0xce   :  { %v120_v31 = vsel %vm110_vm2, %v119_v27, %v115_v26  ;;  %p517_p0 = pnand %p516_p13, %p510_p10 }
  0xcf   :  { %v111_v33 = vsel %vm110_vm2, %v109_v30, %v104_v29 }
  0xd0   :  { %v122_v34 = vsel %vm121_vm3, %v120_v31, %v111_v33 }
  0xd1   :  { %v124_v35 = vadd.f32 %v122_v34, %v82_v32 }
  0xd3   :  { %126 = vst.msk [vmem:[#allocation2] sm:$0x3] %vm72_vm0, %v124_v35 }
  0xda   :  { %v130_v36 = vld [vmem:[#allocation2] sm:$0x3] }
  0xdb   :  { %v131_v37 = vmul.f32 0.00390625, %v130_v36 }
  0xdd   :  { %397 = vmatmul.mubr.msk.f32.vlgmr.msra.gmra.mrb[0].mxu0 %vm141_vm4, %v131_v37 }
 0x1b0   :  { %v211_v39 = vpop.f32.mrb[0].mxu0 }
 0x1b1   :  { %v212_v40 = vadd.f32 %v376_v38, %v211_v39  ;;  %v398_v41 = vpop.f32.mrb[1].mxu0 }
 0x1b3   :  { %v216_v42 = vmul.f32 0.70710677, %v212_v40  ;;  %v215_v0 = vmul.f32 0.5, %v212_v40 }
 0x1b5   :  { %v217_v43 = vand.u32 2147483647, %v216_v42  ;;  %vm237_vm5 = vcmp.lt.f32.partialorder %v216_v42, 0.0 }
 0x1b7   :  { %v218_v44 = vmul.f32 0.3275911, %v217_v43  ;;  %v231_v46 = vsub.f32 0.0, %v217_v43 }
 0x1b9   :  { %v219_v45 = vadd.f32 1.0, %v218_v44  ;;  %v232_v48 = vmul.f32 %v231_v46, %v217_v43 }
 0x1bb   :  { %437 = vrcp.f32 %v219_v45  ;;  %v233_v51 = vmul.f32 1.442695, %v232_v48 }
 0x1bd   :  { %439 = vpow2.f32 %v233_v51 }
 0x1c5   :  { %v438_v47 = vpop.eup %437 }
 0x1c6   :  { %v222_v49 = vmul.f32 1.0614054, %v438_v47 }
 0x1c7   :  { %v440_v59 = vpop.eup %439 }
 0x1c8   :  { %v223_v50 = vadd.f32 -1.4531521, %v222_v49 }
 0x1ca   :  { %v224_v52 = vmul.f32 %v438_v47, %v223_v50 }
 0x1cc   :  { %v225_v53 = vadd.f32 1.4214138, %v224_v52 }
 0x1ce   :  { %v226_v54 = vmul.f32 %v438_v47, %v225_v53 }
 0x1d0   :  { %v227_v55 = vadd.f32 -0.28449672, %v226_v54 }
 0x1d2   :  { %v228_v56 = vmul.f32 %v438_v47, %v227_v55 }
 0x1d4   :  { %v229_v57 = vadd.f32 0.2548296, %v228_v56 }
 0x1d6   :  { %v230_v58 = vmul.f32 %v438_v47, %v229_v57 }
 0x1d8   :  { %v235_v60 = vmul.f32 %v440_v59, %v230_v58 }
 0x1da   :  { %v236_v61 = vsub.f32 1.0, %v235_v60 }
 0x1dc   :  { %v238_v62 = vsub.f32 0.0, %v236_v61 }
 0x1de   :  { %v239_v63 = vsel %vm237_vm5, %v238_v62, %v236_v61 }
 0x1df   :  { %v240_v1 = vadd.f32 1.0, %v239_v63 }
 0x1e1   :  { %v241_v2 = vmul.f32 %v240_v1, %v215_v0 }
 0x1e3   :  { %v243_v3 = vsel %vm242_vm6, %v241_v2, 0.0 }
 0x1e4   :  { %244 = vadd.xlane.f32.xlu0 %v243_v3 }
 0x271   :  { %v245_v4 = vpop.xlane.xlu0 %244 }
 0x272   :  { %v246_v5 = vmul.f32 0.020833334, %v245_v4 }
 0x274   :  { %v247_v6 = vsub.f32 %v241_v2, %v246_v5 }
 0x276   :  { %v248_v7 = vmul.f32 %v247_v6, %v247_v6 }
 0x278   :  { %v249_v8 = vsel %vm242_vm6, %v248_v7, 0.0 }
 0x279   :  { %250 = vadd.xlane.f32.xlu1 %v249_v8 }
 0x306   :  { %v251_v19 = vpop.xlane.xlu1 %250 }
 0x307   :  { %v252_v20 = vmul.f32 0.020833334, %v251_v19 }
 0x309   :  { %v253_v21 = vadd.f32 1e-06, %v252_v20 }
 0x30b   :  { %441 = vrsqrt.f32 %v253_v21 }
 0x315   :  { %v442_v22 = vpop.eup %441 }
 0x316   :  { %v255_v24 = vmul.f32 %v442_v22, %v247_v6 }
 0x318   :  { %v263_v26 = vmul.f32 %v378_v23, %v255_v24 }
 0x31a   :  { %v271_v27 = vadd.f32 %v379_v25, %v263_v26 }
 0x31c   :  { %412 = vmatmul.mubr.msk.f32.vlgmr.msra.gmra.mrb[0].mxu1 %vm285_vm7, %v271_v27 }
 0x3ef   :  { %v355_v28 = vpop.f32.mrb[0].mxu1 }
 0x3f0   :  { %v356_v29 = vadd.f32 %v380_v15, %v355_v28  ;;  %v413_v30 = vpop.f32.mrb[1].mxu1 }
 0x3f2   :  { %359 = vst [vmem:[#allocation9] sm:$0x3] %v356_v29 }
 0x3f3   :  { %520 = shalt.err (!%p517_p0)
}
 0x3f4   :  { %s521_s1 = scalar_lea.hbm %s667_s7, 32 }
 0x3f5   :  { %p522_p1 = scmp.ne.s32.totalorder %s667_s7, %s521_s1  ;;  %p525_p2 = scmp.lt.u32.totalorder %s521_s1, %s667_s7 }
 0x3f7   :  { %p527_p3 = pnand %p525_p2, %p522_p1 }
 0x3f9   :  { %530 = shalt.err (!%p527_p3)
}
 0x3fa   :  { %369 = dma.vmem_to_hbm [thread:$0]  %s367_s23, 32, %s667_s7, [#allocation5]  }
 0x3fb   :  { %535 = dma.done.wait [#allocation5], 32  }
 0x3fc   :  { %536 = vsyncadd [#allocation5], 4294967264 }
 0x3fd   :  { %373 = vsyncpa [#allocation4], 1 }
 0x3fe   :  { %374 = vsyncpa [#allocation7], 1 }
 0x3ff   :  { %375 = vsyncpa [#allocation5], 1 }

// kernel: tpu_custom_call.1
= control target key start
LH: loop header
LB: loop body
LE: loop exit
PB: predicated region body
PF: predicated region fallthrough
CT: control target
= control target key end

     0   :  { %12 = vsyncpa [#allocation4], 0  ;;  %s660_s0 = inlined_call_operand.hbm [shape: f32[2,16,256], index: 0, kind: input, shape index: {}]   ;;  %s661_s1 = inlined_call_operand.hbm [shape: f32[16,48], index: 1, kind: input, shape index: {}]   ;;  %s662_s2 = inlined_call_operand.vmem [shape: f32[1,48], index: 2, kind: input, shape index: {}]   ;;  %s663_s3 = inlined_call_operand.vmem [shape: f32[1,48], index: 3, kind: input, shape index: {}]   ;;  %s664_s4 = inlined_call_operand.vmem [shape: f32[1,48], index: 4, kind: input, shape index: {}]   ;;  %s665_s5 = inlined_call_operand.hbm [shape: f32[48,128], index: 5, kind: input, shape index: {}]   ;;  %s666_s6 = inlined_call_operand.vmem [shape: f32[1,128], index: 6, kind: input, shape index: {}]   ;;  %s667_s7 = inlined_call_operand.hbm [shape: f32[2,128], index: 7, kind: output, shape index: {}]  }
   0x1   :  { %13 = vsyncpa [#allocation7], 0 }
   0x2   :  { %14 = vsyncpa [#allocation5], 0  ;;  %s537_s24 = smov [#allocation6]   ;;  %s443_s28 = scalar_lea.hbm %s661_s1, 256 }
   0x3   :  { %s32_s25 = sshll.u32 %s537_s24, 4  ;;  %p444_p0 = scmp.ne.s32.totalorder %s661_s1, %s443_s28  ;;  %s33_s25 = int_to_ptr.vmem [resolvable:$true] %s32_s25 }
   0x4   :  { %p447_p1 = scmp.lt.u32.totalorder %s443_s28, %s661_s1 }
   0x6   :  { %p449_p2 = pnand %p447_p1, %p444_p0 }
   0x8   :  { %452 = shalt.err (!%p449_p2)
}
   0x9   :  { %s453_s10 = scalar_lea.vmem %s33_s25, 256  ;;  %p458_p4 = scmp.lt.s32.totalorder %s33_s25, %s33_s25 }
   0xa   :  { %p454_p3 = scmp.ne.s32.totalorder %s33_s25, %s453_s10  ;;  %p459_p5 = scmp.lt.s32.totalorder %s453_s10, %s453_s10 }
   0xc   :  { %p460_p6 = por %p459_p5, %p458_p4 }
   0xe   :  { %p461_p7 = pnand %p460_p6, %p454_p3 }
  0x10   :  { %464 = shalt.err (!%p461_p7)
}
  0x11   :  { %s538_s11 = smov 128   ;;  %s539_s12 = smov 8  }
  0x12   :  { %38 = dma.hbm_to_vmem [thread:$0]  %s661_s1, 256, %s33_s25, [#allocation7], %s538_s11, %s538_s11, %s539_s12  }
  0x13   :  { %s540_s15 = smov [#allocation3]   ;;  %s465_s19 = scalar_lea.hbm %s660_s0, 1024 }
  0x14   :  { %s20_s16 = sshll.u32 %s540_s15, 4  ;;  %p466_p8 = scmp.ne.s32.totalorder %s660_s0, %s465_s19  ;;  %s21_s16 = int_to_ptr.vmem [resolvable:$true] %s20_s16 }
  0x15   :  { %p469_p9 = scmp.lt.u32.totalorder %s465_s19, %s660_s0 }
  0x17   :  { %p471_p10 = pnand %p469_p9, %p466_p8 }
  0x19   :  { %474 = shalt.err (!%p471_p10)
}
  0x1a   :  { %s475_s24 = scalar_lea.vmem %s21_s16, 1024  ;;  %p480_p12 = scmp.lt.s32.totalorder %s21_s16, %s21_s16 }
  0x1b   :  { %p476_p11 = scmp.ne.s32.totalorder %s21_s16, %s475_s24  ;;  %p481_p13 = scmp.lt.s32.totalorder %s475_s24, %s475_s24 }
  0x1d   :  { %p482_p0 = por %p481_p13, %p480_p12 }
  0x1f   :  { %p483_p1 = pnand %p482_p0, %p476_p11 }
  0x21   :  { %486 = shalt.err (!%p483_p1)
}
  0x22   :  { %s541_s1 = smov 256   ;;  %s542_s25 = smov 16  }
  0x23   :  { %26 = dma.hbm_to_vmem [thread:$0]  %s660_s0, 1024, %s21_s16, [#allocation4], %s541_s1, %s541_s1, %s542_s25  }
  0x24   :  { %s543_s28 = smov [#allocation8]   ;;  %s487_s9 = scalar_lea.hbm %s665_s5, 768 }
  0x25   :  { %s50_s29 = sshll.u32 %s543_s28, 4  ;;  %p488_p2 = scmp.ne.s32.totalorder %s665_s5, %s487_s9  ;;  %s51_s29 = int_to_ptr.vmem [resolvable:$true] %s50_s29 }
  0x26   :  { %p491_p3 = scmp.lt.u32.totalorder %s487_s9, %s665_s5 }
  0x28   :  { %p493_p4 = pnand %p491_p3, %p488_p2 }
  0x2a   :  { %496 = shalt.err (!%p493_p4)
}
  0x2b   :  { %s497_s17 = scalar_lea.vmem %s51_s29, 768  ;;  %p502_p6 = scmp.lt.s32.totalorder %s51_s29, %s51_s29 }
  0x2c   :  { %p498_p5 = scmp.ne.s32.totalorder %s51_s29, %s497_s17  ;;  %p503_p7 = scmp.lt.s32.totalorder %s497_s17, %s497_s17 }
  0x2e   :  { %p504_p8 = por %p503_p7, %p502_p6 }
  0x30   :  { %p505_p9 = pnand %p504_p8, %p498_p5 }
  0x32   :  { %508 = shalt.err (!%p505_p9)
}
  0x33   :  { %56 = dma.hbm_to_vmem [thread:$0]  %s665_s5, 768, %s51_s29, [#allocation7], %s538_s11, %s538_s11, %s539_s12  }
  0x34   :  { %531 = dma.done.wait [#allocation4], 1024  }
  0x35   :  { %532 = vsyncadd [#allocation4], 4294966272 }
  0x36   :  { %533 = dma.done.wait [#allocation7], 1024  }
  0x37   :  { %534 = vsyncadd [#allocation7], 4294966272  ;;  %v78_v0 = vld [vmem:[#allocation3 + $0x20] sm:$0xff]  ;;  %v79_v1 = vld [vmem:[#allocation3 + $0x28] sm:$0xff]  ;;  %vm72_vm0 = vcmask 123904   ;;  %v544_v12 = vmov 0.0   ;;  %v99_v17 = vlaneseq }
  0x38   :  { %v74_v2 = vld [vmem:[#allocation3] sm:$0xff]  ;;  %v89_v3 = vadd.f32 %v79_v1, %v78_v0  ;;  %v75_v4 = vld [vmem:[#allocation3 + $0x8] sm:$0xff]  ;;  %v80_v5 = vld [vmem:[#allocation3 + $0x30] sm:$0xff]  ;;  %73 = vst.msk [vmem:[#allocation2] sm:$0x3] %vm72_vm0, %v544_v12  ;;  %v545_v15 = vmov 0.0|0.0  }
  0x39   :  { %v81_v6 = vld [vmem:[#allocation3 + $0x38] sm:$0xff]  ;;  %v83_v7 = vadd.f32 %v75_v4, %v74_v2  ;;  %v76_v8 = vld [vmem:[#allocation3 + $0x10] sm:$0xff]  ;;  %v132_v13 = vld [vmem:[#allocation6] sm:$0xff]  ;;  %414 = vmatprep.subr.bf16.mxu0 %v545_v15  ;;  %417 = vmatprep.subr.bf16.mxu1 %v545_v15  ;;  %vm546_vm1 = vmmov 0   ;;  %v100_v18 = vand.u32 127, %v99_v17  ;;  %v102_v19 = vshrl.u32 %v99_v17, 7 }
  0x3a   :  { %v77_v9 = vld [vmem:[#allocation3 + $0x18] sm:$0xff]  ;;  %90 = vadd.xlane.f32.xlu1 %v89_v3  ;;  %v92_v10 = vadd.f32 %v81_v6, %v80_v5  ;;  %v133_v14 = vld [vmem:[#allocation6 + $0x8] sm:$0xff]  ;;  %396 = vmatprep.mubr.msk.f32.mxu0 %vm546_vm1, %v544_v12  ;;  %vm110_vm2 = vcmask 130112   ;;  %vm121_vm3 = vcmask 1041409   ;;  %vm141_vm4 = vcmask 130048   ;;  %s547_s22 = smov [#allocation9]  }
  0x3b   :  { %84 = vadd.xlane.f32.xlu0 %v83_v7  ;;  %v86_v11 = vadd.f32 %v77_v9, %v76_v8  ;;  %v415_v16 = vpack.c.bf16 %v133_v14, %v132_v13  ;;  %411 = vmatprep.mubr.msk.f32.mxu1 %vm546_vm1, %v544_v12  ;;  %v105_v20 = vadd.s32 4294967288, %v100_v18  ;;  %v103_v22 = vsub.s32 %v100_v18, %v102_v19  ;;  %v376_v38 = vld [vmem:[%s662_s2] ss:$0 sm:$0xff]  ;;  %v272_v9 = vld [vmem:[#allocation8] sm:$0xff]  ;;  %v275_v13 = vld [vmem:[#allocation8 + $0x18] sm:$0xff]  ;;  %s366_s23 = sshll.u32 %s547_s22, 4  ;;  %s367_s23 = int_to_ptr.vmem [resolvable:$true] %s366_s23 }
  0x3c   :  { %vm242_vm6 = vcmask 386048   ;;  %v277_v17 = vld [vmem:[#allocation8 + $0x28] sm:$0xff]  ;;  %vm285_vm7 = vcmask 392192   ;;  %p514_p11 = scmp.lt.s32.totalorder %s367_s23, %s367_s23 }
  0x3d   :  { %416 = vmatpush3.bf16.msra.mxu0 %v415_v16  ;;  %v108_v24 = vsub.s32 %v105_v20, %v102_v19  ;;  %v276_v16 = vld [vmem:[#allocation8 + $0x20] sm:$0xff] }
  0x3e   :  { %93 = vadd.xlane.f32.xlu1 %v92_v10  ;;  %v273_v10 = vld [vmem:[#allocation8 + $0x8] sm:$0xff]  ;;  %v424_v18 = vpack.c.bf16 %v277_v17, %v276_v16 }
  0x3f   :  { %87 = vadd.xlane.f32.xlu0 %v86_v11  ;;  %v82_v32 = vld [vmem:[#allocation2] sm:$0x3]  ;;  %v274_v11 = vld [vmem:[#allocation8 + $0x10] sm:$0xff]  ;;  %v418_v12 = vpack.c.bf16 %v273_v10, %v272_v9 }
  0x40   :  { %v421_v14 = vpack.c.bf16 %v275_v13, %v274_v11 }
  0x41   :  { %419 = vmatpush3.bf16.msra.mxu1 %v418_v12 }
  0x42   :  { %420 = vmatprep.subr.bf16.mxu1 %v545_v15 }
  0x45   :  { %422 = vmatpush3.bf16.msra.mxu1 %v421_v14 }
  0x46   :  { %423 = vmatprep.subr.bf16.mxu1 %v545_v15  ;;  %v380_v15 = vld [vmem:[%s666_s6] ss:$0 sm:$0xff] }
  0x49   :  { %425 = vmatpush3.bf16.msra.mxu1 %v424_v18 }
  0xc7   :  { %v91_v21 = vpop.xlane.xlu1 %90 }
  0xc8   :  { %v85_v23 = vpop.xlane.xlu0 %84  ;;  %v115_v26 = vrot.slane %v91_v21, %v103_v22 }
  0xc9   :  { %v104_v29 = vrot.slane %v85_v23, %v103_v22  ;;  %v378_v23 = vld [vmem:[%s663_s3] ss:$0 sm:$0xff]  ;;  %s509_s3 = scalar_lea.vmem %s367_s23, 32 }
  0xca   :  { %p510_p10 = scmp.ne.s32.totalorder %s367_s23, %s509_s3  ;;  %p515_p12 = scmp.lt.s32.totalorder %s509_s3, %s509_s3 }
  0xcb   :  { %v94_v25 = vpop.xlane.xlu1 %93 }
  0xcc   :  { %v119_v27 = vrot.slane %v94_v25, %v108_v24  ;;  %v88_v28 = vpop.xlane.xlu0 %87  ;;  %v379_v25 = vld [vmem:[%s664_s4] ss:$0 sm:$0xff]  ;;  %p516_p13 = por %p515_p12, %p514_p11 }
  0xcd   :  { %v109_v30 = vrot.slane %v88_v28, %v108_v24 }
  0xce   :  { %v120_v31 = vsel %vm110_vm2, %v119_v27, %v115_v26  ;;  %p517_p0 = pnand %p516_p13, %p510_p10 }
  0xcf   :  { %v111_v33 = vsel %vm110_vm2, %v109_v30, %v104_v29 }
  0xd0   :  { %v122_v34 = vsel %vm121_vm3, %v120_v31, %v111_v33 }
  0xd1   :  { %v124_v35 = vadd.f32 %v122_v34, %v82_v32 }
  0xd3   :  { %126 = vst.msk [vmem:[#allocation2] sm:$0x3] %vm72_vm0, %v124_v35 }
  0xda   :  { %v130_v36 = vld [vmem:[#allocation2] sm:$0x3] }
  0xdb   :  { %v131_v37 = vmul.f32 0.00390625, %v130_v36 }
  0xdd   :  { %397 = vmatmul.mubr.msk.f32.vlgmr.msra.gmra.mrb[0].mxu0 %vm141_vm4, %v131_v37 }
 0x1b0   :  { %v211_v39 = vpop.f32.mrb[0].mxu0 }
 0x1b1   :  { %v212_v40 = vadd.f32 %v376_v38, %v211_v39  ;;  %v398_v41 = vpop.f32.mrb[1].mxu0 }
 0x1b3   :  { %v216_v42 = vmul.f32 0.70710677, %v212_v40  ;;  %v215_v0 = vmul.f32 0.5, %v212_v40 }
 0x1b5   :  { %v217_v43 = vand.u32 2147483647, %v216_v42  ;;  %vm237_vm5 = vcmp.lt.f32.partialorder %v216_v42, 0.0 }
 0x1b7   :  { %v218_v44 = vmul.f32 0.3275911, %v217_v43  ;;  %v231_v46 = vsub.f32 0.0, %v217_v43 }
 0x1b9   :  { %v219_v45 = vadd.f32 1.0, %v218_v44  ;;  %v232_v48 = vmul.f32 %v231_v46, %v217_v43 }
 0x1bb   :  { %437 = vrcp.f32 %v219_v45  ;;  %v233_v51 = vmul.f32 1.442695, %v232_v48 }
 0x1bd   :  { %439 = vpow2.f32 %v233_v51 }
 0x1c5   :  { %v438_v47 = vpop.eup %437 }
 0x1c6   :  { %v222_v49 = vmul.f32 1.0614054, %v438_v47 }
 0x1c7   :  { %v440_v59 = vpop.eup %439 }
 0x1c8   :  { %v223_v50 = vadd.f32 -1.4531521, %v222_v49 }
 0x1ca   :  { %v224_v52 = vmul.f32 %v438_v47, %v223_v50 }
 0x1cc   :  { %v225_v53 = vadd.f32 1.4214138, %v224_v52 }
 0x1ce   :  { %v226_v54 = vmul.f32 %v438_v47, %v225_v53 }
 0x1d0   :  { %v227_v55 = vadd.f32 -0.28449672, %v226_v54 }
 0x1d2   :  { %v228_v56 = vmul.f32 %v438_v47, %v227_v55 }
 0x1d4   :  { %v229_v57 = vadd.f32 0.2548296, %v228_v56 }
 0x1d6   :  { %v230_v58 = vmul.f32 %v438_v47, %v229_v57 }
 0x1d8   :  { %v235_v60 = vmul.f32 %v440_v59, %v230_v58 }
 0x1da   :  { %v236_v61 = vsub.f32 1.0, %v235_v60 }
 0x1dc   :  { %v238_v62 = vsub.f32 0.0, %v236_v61 }
 0x1de   :  { %v239_v63 = vsel %vm237_vm5, %v238_v62, %v236_v61 }
 0x1df   :  { %v240_v1 = vadd.f32 1.0, %v239_v63 }
 0x1e1   :  { %v241_v2 = vmul.f32 %v240_v1, %v215_v0 }
 0x1e3   :  { %v243_v3 = vsel %vm242_vm6, %v241_v2, 0.0 }
 0x1e4   :  { %244 = vadd.xlane.f32.xlu0 %v243_v3 }
 0x271   :  { %v245_v4 = vpop.xlane.xlu0 %244 }
 0x272   :  { %v246_v5 = vmul.f32 0.020833334, %v245_v4 }
 0x274   :  { %v247_v6 = vsub.f32 %v241_v2, %v246_v5 }
 0x276   :  { %v248_v7 = vmul.f32 %v247_v6, %v247_v6 }
 0x278   :  { %v249_v8 = vsel %vm242_vm6, %v248_v7, 0.0 }
 0x279   :  { %250 = vadd.xlane.f32.xlu1 %v249_v8 }
 0x306   :  { %v251_v19 = vpop.xlane.xlu1 %250 }
 0x307   :  { %v252_v20 = vmul.f32 0.020833334, %v251_v19 }
 0x309   :  { %v253_v21 = vadd.f32 1e-06, %v252_v20 }
 0x30b   :  { %441 = vrsqrt.f32 %v253_v21 }
 0x315   :  { %v442_v22 = vpop.eup %441 }
 0x316   :  { %v255_v24 = vmul.f32 %v442_v22, %v247_v6 }
 0x318   :  { %v263_v26 = vmul.f32 %v378_v23, %v255_v24 }
 0x31a   :  { %v271_v27 = vadd.f32 %v379_v25, %v263_v26 }
 0x31c   :  { %412 = vmatmul.mubr.msk.f32.vlgmr.msra.gmra.mrb[0].mxu1 %vm285_vm7, %v271_v27 }
 0x3ef   :  { %v355_v28 = vpop.f32.mrb[0].mxu1 }
 0x3f0   :  { %v356_v29 = vadd.f32 %v380_v15, %v355_v28  ;;  %v413_v30 = vpop.f32.mrb[1].mxu1 }
 0x3f2   :  { %359 = vst [vmem:[#allocation9] sm:$0x3] %v356_v29 }
 0x3f3   :  { %520 = shalt.err (!%p517_p0)
}
 0x3f4   :  { %s521_s1 = scalar_lea.hbm %s667_s7, 32 }
 0x3f5   :  { %p522_p1 = scmp.ne.s32.totalorder %s667_s7, %s521_s1  ;;  %p525_p2 = scmp.lt.u32.totalorder %s521_s1, %s667_s7 }
 0x3f7   :  { %p527_p3 = pnand %p525_p2, %p522_p1 }
 0x3f9   :  { %530 = shalt.err (!%p527_p3)
}
 0x3fa   :  { %369 = dma.vmem_to_hbm [thread:$0]  %s367_s23, 32, %s667_s7, [#allocation5]  }
 0x3fb   :  { %535 = dma.done.wait [#allocation5], 32  }
 0x3fc   :  { %536 = vsyncadd [#allocation5], 4294967264 }
 0x3fd   :  { %373 = vsyncpa [#allocation4], 1 }
 0x3fe   :  { %374 = vsyncpa [#allocation7], 1 }
 0x3ff   :  { %375 = vsyncpa [#allocation5], 1 }

</bundles_post_ra>
